<compile_context>
chip_gen: v7x
topology: tpu7x:2x2x1
jax: 0.10.0
libtpu: 0.0.40
codegen_flags: <defaults>
</compile_context>

<pallas_src>
import functools
from math import sqrt

import jax
import jax.numpy as jnp
from jax import lax
from jax.experimental import pallas as pl
from jax.experimental.pallas import tpu as pltpu


# ----------------------------------------------------------------------------
# Generation-aware VMEM budget helpers
# ----------------------------------------------------------------------------
_DEFAULT_PHYS_VMEM = 64 * 1024 * 1024  # assume the tightest budget (v7x) if unknown


def _phys_vmem_bytes():
    try:
        info = pltpu.get_tpu_info()
        cap = getattr(info, "vmem_capacity_bytes", None)
        if cap:
            return int(cap)
    except Exception:
        pass
    return _DEFAULT_PHYS_VMEM


def _vmem_caps():
    """(working-set budget, vmem_limit cap), leaving headroom for compiler scratch."""
    phys = _phys_vmem_bytes()
    cap = int(phys * 0.75)      # ~48 MiB on v7x, ~96 MiB on v5e/v6e
    budget = int(cap * 0.85)
    return budget, cap


def _maybe_vmem_limit(need_bytes, cap):
    if need_bytes <= 28 * 1024 * 1024:
        return None             # default scoped limit is enough
    return int(min(cap, need_bytes + (8 << 20)))


def _round_up(x, m):
    return ((x + m - 1) // m) * m


def _pick_tile(dim, target, mult):
    """Largest multiple of `mult` (<= target) that evenly divides `dim`;
    falls back to the full dim (a full-dim block is always layout-legal)."""
    if dim <= target:
        return dim
    t = (min(target, dim) // mult) * mult
    while t >= mult:
        if dim % t == 0:
            return t
        t -= mult
    return dim


def _tile_candidates(dim, target, mult):
    cands = []
    t = _pick_tile(dim, target, mult)
    while t not in cands:
        cands.append(t)
        if t <= mult:
            break
        t = _pick_tile(dim, max(mult, t // 2), mult)
    return cands


def _divisors_desc(n):
    return [d for d in range(n, 0, -1) if n % d == 0]


# ----------------------------------------------------------------------------
# Q/K/V projection: (B, N, d_model) -> head-major (B, H, N, d_head) in bf16.
# One wide bf16 MXU matmul per row tile, weight VMEM-resident, heads split with
# static lane slices and stored to leading dims (no HBM transpose needed).
# ----------------------------------------------------------------------------
def _qkv_proj_kernel(x_ref, w_ref, b_ref, o_ref, *, heads_per_block, d_head):
    # x_ref: (1, tn, d_model)      activation tile (cast to bf16 for the MXU)
    # w_ref: (d_model, hg*d_head)  bf16 weight block, resident across row tiles
    # b_ref: (1, hg*d_head)        f32 bias block
    # o_ref: (1, hg, tn, d_head)   bf16 head-major output
    x = x_ref[0].astype(jnp.bfloat16)
    y = jnp.dot(x, w_ref[...], preferred_element_type=jnp.float32)   # (tn, hg*dh) f32
    y = (y + b_ref[...]).astype(o_ref.dtype)
    for h in range(heads_per_block):                                  # static unroll
        o_ref[0, h, :, :] = y[:, h * d_head:(h + 1) * d_head]


def qkv_projection(x, w_bf16, b_f32, n_heads, *, tn_target=512):
    """x: (B, N, d_model); w: (d_model, H*dh) bf16; b: (H*dh,) f32
    -> (B, H, N, dh) bf16."""
    B, N, d_model = x.shape
    d_out = w_bf16.shape[1]
    dh = d_out // n_heads

    budget, cap = _vmem_caps()
    xb = jnp.dtype(x.dtype).itemsize

    def need(hg, tn):
        return (2 * d_model * _round_up(hg * dh, 128) * 2      # weight (double-buffered)
                + 2 * tn * _round_up(d_model, 128) * xb        # activation tile
                + 2 * hg * tn * _round_up(dh, 128) * 2         # head-major output tile
                + tn * _round_up(hg * dh, 128) * 4             # f32 accumulator
                + 2 * _round_up(hg * dh, 128) * 4)             # bias

    tn_cands = _tile_candidates(N, tn_target, 16)
    sel = None
    for tn in tn_cands:
        for hg in _divisors_desc(n_heads):
            # partial head-group weight blocks need a 128-lane-aligned width
            if hg != n_heads and (hg * dh) % 128 != 0:
                continue
            if need(hg, tn) <= budget:
                sel = (hg, tn)
                break
        if sel is not None:
            break
    if sel is None:
        sel = (n_heads, tn_cands[-1])   # raise the vmem limit below instead
    hg, tn = sel

    kernel = functools.partial(_qkv_proj_kernel, heads_per_block=hg, d_head=dh)
    return pl.pallas_call(
        kernel,
        out_shape=jax.ShapeDtypeStruct((B, n_heads, N, dh), jnp.bfloat16),
        grid=(B, n_heads // hg, N // tn),
        in_specs=[
            pl.BlockSpec((1, tn, d_model), lambda b, g, i: (b, i, 0)),
            pl.BlockSpec((d_model, hg * dh), lambda b, g, i: (0, g)),
            pl.BlockSpec((1, hg * dh), lambda b, g, i: (0, g)),
        ],
        out_specs=pl.BlockSpec((1, hg, tn, dh), lambda b, g, i: (b, g, i, 0)),
        compiler_params=pltpu.CompilerParams(
            dimension_semantics=("parallel", "parallel", "parallel"),
            vmem_limit_bytes=_maybe_vmem_limit(need(hg, tn), cap)),
    )(x, w_bf16, b_f32.reshape(1, d_out).astype(jnp.float32))


# ----------------------------------------------------------------------------
# Full attention on head-major blocks (leading-batch einsums, dense stores).
# ----------------------------------------------------------------------------
def _attention_kernel(q_ref, k_ref, v_ref, o_ref, a_ref):
    # q_ref: (1, hb, tl, E) bf16     (scale already folded into the Q projection)
    # k_ref: (1, hb, S,  E) bf16     (resident across query tiles)
    # v_ref: (1, hb, S,  D) bf16
    # o_ref: (1, hb, tl, D) bf16     context block (single dense store)
    # a_ref: (1, hb, tl, S)          attention map block (single dense store, bf16)
    q = q_ref[0]
    k = k_ref[0]
    v = v_ref[0]

    # bf16 operands, f32 accumulation on the MXU; head axis is a leading batch dim.
    s = jnp.einsum("hle,hse->hls", q, k, preferred_element_type=jnp.float32)
    s = s - jnp.max(s, axis=-1, keepdims=True)
    p = jnp.exp(s)
    # Exact reciprocal (tiny (hb, tl, 1) tensor) so returned A rows sum to 1.
    p = p * pl.reciprocal(jnp.sum(p, axis=-1, keepdims=True))

    a_ref[0] = p.astype(a_ref.dtype)

    ctx = jnp.einsum("hls,hsd->hld", p.astype(v.dtype), v,
                     preferred_element_type=jnp.float32)
    o_ref[0] = ctx.astype(o_ref.dtype)


def full_attention(q, k, v, *, tl_target=512, attn_dtype=jnp.bfloat16):
    """q: (B, H, L, E) bf16; k: (B, H, S, E) bf16; v: (B, H, S, D) bf16
    -> ctx (B, H, L, D) bf16, attn (B, H, L, S) attn_dtype."""
    B, H, L, E = q.shape
    S = k.shape[2]
    D = v.shape[3]

    budget, cap = _vmem_caps()
    ab = jnp.dtype(attn_dtype).itemsize
    pe, pd, ps = _round_up(E, 128), _round_up(D, 128), _round_up(S, 128)

    def need(hb, tl):
        return (2 * hb * tl * pe * 2            # q block
                + 2 * hb * S * pe * 2           # k block (TODO(synk): pl.Buffered(1))
                + 2 * hb * S * pd * 2           # v block
                + 2 * hb * tl * pd * 2          # ctx block
                + 2 * hb * tl * ps * ab         # attention-map block
                + hb * tl * ps * 4)             # f32 scores live set / spill headroom

    tl_cands = _tile_candidates(L, tl_target, 16)
    sel = None
    for tl in tl_cands:
        for hb in _divisors_desc(H):
            if need(hb, tl) <= budget:
                sel = (hb, tl)
                break
        if sel is not None:
            break
    if sel is None:
        sel = (1, tl_cands[-1])    # raise the vmem limit instead of blowing past silently
    hb, tl = sel

    ctx, attn = pl.pallas_call(
        _attention_kernel,
        out_shape=(jax.ShapeDtypeStruct((B, H, L, D), q.dtype),
                   jax.ShapeDtypeStruct((B, H, L, S), attn_dtype)),
        grid=(B, H // hb, L // tl),
        in_specs=[
            pl.BlockSpec((1, hb, tl, E), lambda b, g, l: (b, g, l, 0)),
            pl.BlockSpec((1, hb, S, E), lambda b, g, l: (b, g, 0, 0)),
            pl.BlockSpec((1, hb, S, D), lambda b, g, l: (b, g, 0, 0)),
        ],
        out_specs=(
            pl.BlockSpec((1, hb, tl, D), lambda b, g, l: (b, g, l, 0)),
            pl.BlockSpec((1, hb, tl, S), lambda b, g, l: (b, g, l, 0)),
        ),
        compiler_params=pltpu.CompilerParams(
            dimension_semantics=("parallel", "parallel", "parallel"),
            vmem_limit_bytes=_maybe_vmem_limit(need(hb, tl), cap)),
    )(q, k, v)
    return ctx, attn


# ----------------------------------------------------------------------------
# Out projection: head-major context (B, H, L, D) -> (B, L, d_model).
# Heads are merged back into a lane-dense (tl, H*D) activation with one concat,
# followed by a single deep (K = H*D) bf16 MXU matmul. No XLA transpose.
# ----------------------------------------------------------------------------
def _out_proj_kernel(x_ref, w_ref, b_ref, o_ref, *, n_heads):
    # x_ref: (1, H, tl, D) bf16; w_ref: (H*D, d_model) bf16 (resident);
    # b_ref: (1, d_model) f32;   o_ref: (1, tl, d_model)
    xs = [x_ref[0, h, :, :] for h in range(n_heads)]
    x = xs[0] if n_heads == 1 else jnp.concatenate(xs, axis=-1)   # (tl, H*D) bf16
    y = jnp.dot(x, w_ref[...], preferred_element_type=jnp.float32)
    o_ref[0] = (y + b_ref[...]).astype(o_ref.dtype)


def out_projection(ctx, w_bf16, b_f32, *, out_dtype=jnp.float32, tl_target=512):
    B, H, L, D = ctx.shape
    d_model = w_bf16.shape[1]
    budget, cap = _vmem_caps()
    ob = jnp.dtype(out_dtype).itemsize

    def need(tl):
        return (2 * (H * D) * _round_up(d_model, 128) * 2        # resident weight
                + 2 * H * tl * _round_up(D, 128) * 2             # context block
                + tl * _round_up(H * D, 128) * 2                 # merged activation
                + tl * _round_up(d_model, 128) * 4               # f32 accumulator
                + 2 * tl * _round_up(d_model, 128) * ob)         # output block

    tl_cands = _tile_candidates(L, tl_target, 16)
    tl = None
    for cand in tl_cands:
        if need(cand) <= budget:
            tl = cand
            break
    if tl is None:
        tl = tl_cands[-1]

    kernel = functools.partial(_out_proj_kernel, n_heads=H)
    return pl.pallas_call(
        kernel,
        out_shape=jax.ShapeDtypeStruct((B, L, d_model), out_dtype),
        grid=(B, L // tl),
        in_specs=[
            pl.BlockSpec((1, H, tl, D), lambda b, i: (b, 0, i, 0)),
            pl.BlockSpec((H * D, d_model), lambda b, i: (0, 0)),
            pl.BlockSpec((1, d_model), lambda b, i: (0, 0)),
        ],
        out_specs=pl.BlockSpec((1, tl, d_model), lambda b, i: (b, i, 0)),
        compiler_params=pltpu.CompilerParams(
            dimension_semantics=("parallel", "parallel"),
            vmem_limit_bytes=_maybe_vmem_limit(need(tl), cap)),
    )(ctx, w_bf16, b_f32.reshape(1, d_model).astype(jnp.float32))


# ----------------------------------------------------------------------------
# AttentionLayer forward
# ----------------------------------------------------------------------------
def init_attention_layer_params(key, d_model, n_heads, d_keys=None, d_values=None,
                                dtype=jnp.float32):
    d_keys = d_keys or d_model // n_heads
    d_values = d_values or d_model // n_heads
    ks = jax.random.split(key, 8)

    def lin(kw, kb, d_in, d_out):
        # PyTorch nn.Linear default init: U(-1/sqrt(d_in), 1/sqrt(d_in))
        bound = 1.0 / sqrt(d_in)
        w = jax.random.uniform(kw, (d_in, d_out), dtype, -bound, bound)
        b = jax.random.uniform(kb, (d_out,), dtype, -bound, bound)
        return w, b

    return {
        "q": lin(ks[0], ks[1], d_model, d_keys * n_heads),
        "k": lin(ks[2], ks[3], d_model, d_keys * n_heads),
        "v": lin(ks[4], ks[5], d_model, d_values * n_heads),
        "o": lin(ks[6], ks[7], d_values * n_heads, d_model),
        "n_heads": n_heads,
        "d_keys": d_keys,
        "d_values": d_values,
    }


def attention_layer_forward(params, queries, keys, values, attn_mask=None,
                            tau=None, delta=None, levels=None,
                            attn_dtype=jnp.bfloat16):
    # TODO(synk): attn_mask / tau / delta / levels are ignored (FullAttention with
    # mask_flag=False, eval mode -> no dropout), matching the wrapped module.
    H = params["n_heads"]
    E = params["d_keys"]

    wq, bq = params["q"]
    wk, bk = params["k"]
    wv, bv = params["v"]
    wo, bo = params["o"]

    # Fold the 1/sqrt(E) softmax scale into the Q projection (one-time, weight-sized)
    # and pre-cast weights to bf16 (bf16 MXU throughput, half the weight DMA).
    scale = 1.0 / sqrt(E)
    wq_b = (wq * scale).astype(jnp.bfloat16)
    bq_s = bq * scale
    wk_b = wk.astype(jnp.bfloat16)
    wv_b = wv.astype(jnp.bfloat16)
    wo_b = wo.astype(jnp.bfloat16)

    # Head-major bf16 Q/K/V straight out of the projection kernel: the attention
    # kernel never slices the head axis.
    q = qkv_projection(queries, wq_b, bq_s, H)      # (B, H, L, E) bf16
    k = qkv_projection(keys, wk_b, bk, H)           # (B, H, S, E) bf16
    v = qkv_projection(values, wv_b, bv, H)         # (B, H, S, D) bf16

    ctx, attn = full_attention(q, k, v, attn_dtype=attn_dtype)

    out = out_projection(ctx, wo_b, bo, out_dtype=queries.dtype)   # (B, L, d_model)
    return out, attn


# ----------------------------------------------------------------------------
# Demo / smoke test
# ----------------------------------------------------------------------------
if __name__ == "__main__":
    B, L, S = 2, 8, 8
    d_model, n_heads = 32, 4

    key = jax.random.PRNGKey(0)
    kp, kq, kk, kv = jax.random.split(key, 4)

    params = init_attention_layer_params(kp, d_model, n_heads)

    queries = jax.random.normal(kq, (B, L, d_model), jnp.float32)
    keys = jax.random.normal(kk, (B, S, d_model), jnp.float32)
    values = jax.random.normal(kv, (B, S, d_model), jnp.float32)

    out, attn = attention_layer_forward(params, queries, keys, values, attn_mask=None)
    jax.block_until_ready(out)
    jax.block_until_ready(attn)

    assert out.shape == (B, L, d_model)
    assert attn.shape == (B, n_heads, L, S)

    # Pure-JAX f32 reference. The kernels use bf16 MXU operands and store Q/K/V,
    # the attention map and the context in bf16, so tolerances are loosened.
    def ref_forward(params, q_in, k_in, v_in):
        H, E, D = params["n_heads"], params["d_keys"], params["d_values"]
        wq, bq = params["q"]; wk, bk = params["k"]
        wv, bv = params["v"]; wo, bo = params["o"]
        Bq, Lq, dm = q_in.shape
        Sq = k_in.shape[1]
        q = (q_in @ wq + bq).reshape(Bq, Lq, H, E)
        k = (k_in @ wk + bk).reshape(Bq, Sq, H, E)
        v = (v_in @ wv + bv).reshape(Bq, Sq, H, D)
        scores = jnp.einsum("blhe,bshe->bhls", q, k) / sqrt(E)
        A = jax.nn.softmax(scores, axis=-1)
        o = jnp.einsum("bhls,bshd->blhd", A, v).reshape(Bq, Lq, H * D)
        return o @ wo + bo, A

    out_ref, attn_ref = ref_forward(params, queries, keys, values)
    attn_f32 = attn.astype(jnp.float32)
    assert jnp.allclose(out, out_ref, atol=6e-2, rtol=6e-2), \
        f"out mismatch: {jnp.max(jnp.abs(out - out_ref))}"
    assert jnp.allclose(attn_f32, attn_ref, atol=2e-2, rtol=2e-2), \
        f"attn mismatch: {jnp.max(jnp.abs(attn_f32 - attn_ref))}"

    print("KERNEL_OK")
</pallas_src>

<mosaic_0001>
module attributes {stable_mosaic.version = 11 : i64} {
  func.func @_qkv_proj_kernel(%arg0: i32, %arg1: i32, %arg2: i32, %arg3: memref<1x8x32xf32, #tpu.memory_space<vmem>>, %arg4: memref<32x32xbf16, #tpu.memory_space<vmem>>, %arg5: memref<1x32xf32, #tpu.memory_space<vmem>>, %arg6: memref<1x4x8x8xbf16, #tpu.memory_space<vmem>>) attributes {dimension_semantics = [#tpu.dimension_semantics<parallel>, #tpu.dimension_semantics<parallel>, #tpu.dimension_semantics<parallel>], iteration_bounds = array<i64: 2, 1, 1>, scalar_prefetch = 0 : i64, scratch_operands = 0 : i64, tpu.core_type = #tpu.core_type<tc>, window_params = [{transform_indices = @transform_0, window_bounds = array<i64: 1, 8, 32>}, {transform_indices = @transform_1, window_bounds = array<i64: 32, 32>}, {transform_indices = @transform_2, window_bounds = array<i64: 1, 32>}, {transform_indices = @transform_3, window_bounds = array<i64: 1, 4, 8, 8>}]} {
    %c0 = arith.constant 0 : index
    %c0_0 = arith.constant 0 : index
    %c0_1 = arith.constant 0 : index
    %0 = vector.load %arg3[%c0, %c0_0, %c0_1] : memref<1x8x32xf32, #tpu.memory_space<vmem>>, vector<1x8x32xf32>
    %1 = vector.shape_cast %0 : vector<1x8x32xf32> to vector<8x32xf32>
    %2 = arith.truncf %1 : vector<8x32xf32> to vector<8x32xbf16>
    %c0_2 = arith.constant 0 : index
    %c0_3 = arith.constant 0 : index
    %3 = vector.load %arg4[%c0_2, %c0_3] : memref<32x32xbf16, #tpu.memory_space<vmem>>, vector<32x32xbf16>
    %cst = arith.constant dense<0.000000e+00> : vector<8x32xf32>
    %4 = tpu.matmul %2, %3, %cst {dimension_numbers = #tpu.dot_dimension_numbers<[1], [0], [0], [1], [0, 0, 1, 1], [], []>} : vector<8x32xbf16>, vector<32x32xbf16>, vector<8x32xf32> -> vector<8x32xf32>
    %c0_4 = arith.constant 0 : index
    %c0_5 = arith.constant 0 : index
    %5 = vector.load %arg5[%c0_4, %c0_5] : memref<1x32xf32, #tpu.memory_space<vmem>>, vector<1x32xf32>
    %6 = vector.broadcast %5 : vector<1x32xf32> to vector<8x32xf32>
    %7 = arith.addf %4, %6 : vector<8x32xf32>
    %8 = arith.truncf %7 : vector<8x32xf32> to vector<8x32xbf16>
    %9 = vector.extract_strided_slice %8 {offsets = [0, 0], sizes = [8, 8], strides = [1, 1]} : vector<8x32xbf16> to vector<8x8xbf16>
    %c0_6 = arith.constant 0 : index
    %c0_7 = arith.constant 0 : index
    %c0_8 = arith.constant 0 : index
    %c0_9 = arith.constant 0 : index
    %10 = vector.load %arg6[%c0_6, %c0_7, %c0_8, %c0_9] : memref<1x4x8x8xbf16, #tpu.memory_space<vmem>>, vector<1x1x8x8xbf16>
    %11 = vector.shape_cast %10 : vector<1x1x8x8xbf16> to vector<8x8xbf16>
    %12 = vector.shape_cast %9 : vector<8x8xbf16> to vector<1x1x8x8xbf16>
    tpu.vector_store %arg6[%c0_6, %c0_7, %c0_8, %c0_9], %12 {strides = array<i32>} : memref<1x4x8x8xbf16, #tpu.memory_space<vmem>>, vector<1x1x8x8xbf16>,
    %13 = vector.extract_strided_slice %8 {offsets = [0, 8], sizes = [8, 8], strides = [1, 1]} : vector<8x32xbf16> to vector<8x8xbf16>
    %c0_10 = arith.constant 0 : index
    %c1 = arith.constant 1 : index
    %c0_11 = arith.constant 0 : index
    %c0_12 = arith.constant 0 : index
    %14 = vector.load %arg6[%c0_10, %c1, %c0_11, %c0_12] : memref<1x4x8x8xbf16, #tpu.memory_space<vmem>>, vector<1x1x8x8xbf16>
    %15 = vector.shape_cast %14 : vector<1x1x8x8xbf16> to vector<8x8xbf16>
    %16 = vector.shape_cast %13 : vector<8x8xbf16> to vector<1x1x8x8xbf16>
    tpu.vector_store %arg6[%c0_10, %c1, %c0_11, %c0_12], %16 {strides = array<i32>} : memref<1x4x8x8xbf16, #tpu.memory_space<vmem>>, vector<1x1x8x8xbf16>,
    %17 = vector.extract_strided_slice %8 {offsets = [0, 16], sizes = [8, 8], strides = [1, 1]} : vector<8x32xbf16> to vector<8x8xbf16>
    %c0_13 = arith.constant 0 : index
    %c2 = arith.constant 2 : index
    %c0_14 = arith.constant 0 : index
    %c0_15 = arith.constant 0 : index
    %18 = vector.load %arg6[%c0_13, %c2, %c0_14, %c0_15] : memref<1x4x8x8xbf16, #tpu.memory_space<vmem>>, vector<1x1x8x8xbf16>
    %19 = vector.shape_cast %18 : vector<1x1x8x8xbf16> to vector<8x8xbf16>
    %20 = vector.shape_cast %17 : vector<8x8xbf16> to vector<1x1x8x8xbf16>
    tpu.vector_store %arg6[%c0_13, %c2, %c0_14, %c0_15], %20 {strides = array<i32>} : memref<1x4x8x8xbf16, #tpu.memory_space<vmem>>, vector<1x1x8x8xbf16>,
    %21 = vector.extract_strided_slice %8 {offsets = [0, 24], sizes = [8, 8], strides = [1, 1]} : vector<8x32xbf16> to vector<8x8xbf16>
    %c0_16 = arith.constant 0 : index
    %c3 = arith.constant 3 : index
    %c0_17 = arith.constant 0 : index
    %c0_18 = arith.constant 0 : index
    %22 = vector.load %arg6[%c0_16, %c3, %c0_17, %c0_18] : memref<1x4x8x8xbf16, #tpu.memory_space<vmem>>, vector<1x1x8x8xbf16>
    %23 = vector.shape_cast %22 : vector<1x1x8x8xbf16> to vector<8x8xbf16>
    %24 = vector.shape_cast %21 : vector<8x8xbf16> to vector<1x1x8x8xbf16>
    tpu.vector_store %arg6[%c0_16, %c3, %c0_17, %c0_18], %24 {strides = array<i32>} : memref<1x4x8x8xbf16, #tpu.memory_space<vmem>>, vector<1x1x8x8xbf16>,
    return
  }
  func.func @transform_0(%arg0: i32, %arg1: i32, %arg2: i32) -> (i32, i32, i32) {
    %c0_i32 = arith.constant 0 : i32
    %c0_i32_0 = arith.constant 0 : i32
    return %arg0, %arg2, %c0_i32 : i32, i32, i32
  }
  func.func @transform_1(%arg0: i32, %arg1: i32, %arg2: i32) -> (i32, i32) {
    %c0_i32 = arith.constant 0 : i32
    %c0_i32_0 = arith.constant 0 : i32
    return %c0_i32, %arg1 : i32, i32
  }
  func.func @transform_2(%arg0: i32, %arg1: i32, %arg2: i32) -> (i32, i32) {
    %c0_i32 = arith.constant 0 : i32
    %c0_i32_0 = arith.constant 0 : i32
    return %c0_i32, %arg1 : i32, i32
  }
  func.func @transform_3(%arg0: i32, %arg1: i32, %arg2: i32) -> (i32, i32, i32, i32) {
    %c0_i32 = arith.constant 0 : i32
    %c0_i32_0 = arith.constant 0 : i32
    return %arg0, %arg1, %arg2, %c0_i32 : i32, i32, i32, i32
  }
}

</mosaic_0001>

<bundles_post_ra>
// kernel: tpu_custom_call.1
= control target key start
LH: loop header
LB: loop body
LE: loop exit
PB: predicated region body
PF: predicated region fallthrough
CT: control target
= control target key end

     0   :  { %8 = vsyncpa [#allocation3], 0  ;;  %s994_s0 = inlined_call_operand.hbm [shape: f32[2,8,32], index: 0, kind: input, shape index: {}]   ;;  %s995_s1 = inlined_call_operand.hbm [shape: bf16[32,32], index: 1, kind: input, shape index: {}]   ;;  %s996_s2 = inlined_call_operand.vmem [shape: f32[1,32], index: 2, kind: input, shape index: {}]   ;;  %s997_s3 = inlined_call_operand.hbm [shape: bf16[2,4,8,8], index: 3, kind: output, shape index: {}]  }
   0x1   :  { %10 = vsyncpa [#allocation3 + $0x1], 0 }
   0x2   :  { %11 = vsyncpa [#allocation6], 0 }
   0x3   :  { %12 = vsyncpa [#allocation4], 0 }
   0x4   :  { %14 = vsyncpa [#allocation4 + $0x1], 0  ;;  %s770_s12 = smov 0   ;;  %s772_s13 = smov 0  }
   0x5   :  { %s774_s14 = smov 0   ;;  %s776_s15 = smov 0  }
   0x6   :  { %s778_s16 = smov 0   ;;  %s780_s17 = smov 0  }
   0x7 LB: > { %s470_s18 = sadd.s32 4294967295, %s736_s17   ;;  %s471_s19 = sadd.s32 4294967294, %s736_s17   ;;  %s736_s17 = sphi %s780_s17, %s20_s17   ;;  %s732_s16 = sphi %s778_s16, %s1021_s16   ;;  %s728_s15 = sphi %s776_s15, %s1020_s15   ;;  %s724_s14 = sphi %s774_s14, %s1019_s14   ;;  %s720_s13 = sphi %s772_s13, %s1018_s13   ;;  %s716_s12 = sphi %s770_s12, %s1017_s12  }
   0x8   : > { %p61_p0 = scmp.ne.s32.totalorder %s720_s13, %s716_s12  ;;  %p804_p1 = scmp.eq.s32.totalorder %s470_s18, 0 }
   0x9   : > { %p808_p2 = scmp.eq.s32.totalorder %s470_s18, 1  ;;  %p147_p3 = scmp.eq.s32.totalorder %s471_s19, 1 }
   0xa   : > { %s1002_s20 = scalar_select %p804_p1, 1, 0 }
   0xb   : > { %s1003_s21 = scalar_select %p808_p2, 1, 0 }
   0xc   : > { %p814_p4 = por %p804_p1, %p61_p0  ;;  %p472_p5 = scmp.ge.s32.totalorder %s736_s17, 1 }
   0xd   : > { %p819_p6 = por %p147_p3, %p61_p0  ;;  %p154_p7 = scmp.lt.s32.totalorder %s736_s17, 3 }
   0xe   : > { %s1004_s22 = scalar_select %p814_p4, 1, 0 }
   0xf   : > { %s1005_s23 = scalar_select %p819_p6, 1, 0 }
  0x10   : > { %p824_p8 = pnand %p472_p5, %p154_p7  ;;  %s738_s25 = smov [#allocation5]  }
  0x11   : > { %s168_s26 = sshll.u32 %s738_s25, 4  ;;  %s39_s28 = sadd.s32 1, %s732_s16  ;;  %s169_s26 = int_to_ptr.vmem [resolvable:$true] %s168_s26 }
  0x12   : > { %s1006_s24 = scalar_select %p824_p8, 1, 0 }
  0x13   : > { %p516_p9 = pneg %p824_p8  ;;  %s592_s4 = scalar_lea.hbm %s995_s1, 256 }
  0x14   : > { %p593_p12 = scmp.ne.s32.totalorder %s995_s1, %s592_s4  ;;  %p599_p5 = scmp.lt.u32.totalorder %s592_s4, %s995_s1 }
  0x15   : > { %p833_p11 = pnand %p516_p9, %p804_p1 }
  0x17   : > { %p594_p13 = pneg %p833_p11 }
  0x19   : > { %p595_p0 = pnand %p594_p13, %p593_p12 }
  0x1b   : > { %p596_p3 = pneg %p595_p0 }
  0x1d   : > { %p601_p7 = pnand %p599_p5, %p596_p3 }
  0x1f   : > { %604 = shalt.err (!%p601_p7)
}
  0x20   : > { %s605_s9 = scalar_lea.vmem %s169_s26, 256  ;;  %p613_p1 = scmp.lt.s32.totalorder %s169_s26, %s169_s26 }
  0x21   : > { %p606_p9 = scmp.ne.s32.totalorder %s169_s26, %s605_s9  ;;  %p614_p4 = scmp.lt.s32.totalorder %s605_s9, %s605_s9 }
  0x23   : > { %p608_p10 = pnand %p606_p9, %p594_p13  ;;  %p615_p8 = por %p614_p4, %p613_p1 }
  0x25   : > { %p609_p6 = pneg %p608_p10 }
  0x27   : > { %p616_p2 = pnand %p615_p8, %p609_p6 }
  0x29   : > { %619 = shalt.err (!%p616_p2)
}
  0x2a   : > { %s739_s10 = smov 64   ;;  %s740_s11 = smov 4  }
  0x2b   : > { %519 = dma.hbm_to_vmem [thread:$0]  (!%p833_p11), %s995_s1, 256, %s169_s26, [#allocation6], %s739_s10, %s739_s10, %s740_s11  }
  0x2c   : > { %p41_p1 = scmp.ge.s32.totalorder %s39_s28, 2  ;;  %s48_s25 = sadd.s32 1, %s724_s14 }
  0x2d   : > { %p55_p2 = scmp.ne.s32.totalorder %s724_s14, %s720_s13  ;;  %p56_p4 = scmp.eq.s32.totalorder %s736_s17, 0 }
  0x2e   : > { %s1023_s28 = smov (%p41_p1, %s39_s28), 0  ;;  %p1009_p8 = scmp.ne.s32.totalorder %s1003_s21, 0 }
  0x2f   : > { %p860_p6 = por %p56_p4, %p55_p2  ;;  %s43_s27 = ssub.s32 %s732_s16, %s1023_s28 }
  0x30   : > { %p866_p10 = por %p1009_p8, %p55_p2  ;;  %p529_p12 = scmp.lt.s32.totalorder %s736_s17, 2 }
  0x31   : > { %p46_p11 = scmp.eq.s32.totalorder %s43_s27, 0  ;;  %s188_s26 = sand.u32 1, %s724_s14  }
  0x32   : > { %s476_s4 = sshll.u32 %s188_s26, 3  ;;  %s477_s6 = sshll.u32 %s732_s16, 7 }
  0x33   : > { %s875_s5 = scalar_select %p46_p11, %s724_s14, %s48_s25  }
  0x34   : > { %s881_s9 = scalar_lea.hbm %s994_s0, %s477_s6  ;;  %s192_s21 = scalar_lea.vmem [#allocation2], %s476_s4 }
  0x35   : > { %s200_s10 = sshll.u32 %s192_s21, 4  ;;  %p887_p13 = pnand %p529_p12, %p860_p6  ;;  %s883_s10 = int_to_ptr.vmem [resolvable:$true] %s200_s10 }
  0x36   : > { %s189_s18 = scalar_lea.sflag [#allocation3], %s188_s26  ;;  %s620_s19 = scalar_lea.hbm %s881_s9, 128 }
  0x37   : > { %p621_p0 = scmp.ne.s32.totalorder %s881_s9, %s620_s19  ;;  %p622_p3 = pneg %p887_p13 }
  0x38   : > { %s625_s4 = scalar_lea.hbm %s994_s0, 256  ;;  %p626_p9 = scmp.lt.u32.totalorder %s881_s9, %s994_s0 }
  0x39   : > { %p623_p5 = pnand %p622_p3, %p621_p0  ;;  %p627_p1 = scmp.lt.u32.totalorder %s625_s4, %s620_s19 }
  0x3a   : > { %p629_p4 = scmp.lt.u32.totalorder %s620_s19, %s881_s9 }
  0x3b   : > { %p624_p7 = pneg %p623_p5  ;;  %p628_p2 = por %p627_p1, %p626_p9 }
  0x3d   : > { %p630_p6 = por %p629_p4, %p628_p2 }
  0x3f   : > { %p631_p8 = pnand %p630_p6, %p624_p7 }
  0x41   : > { %634 = shalt.err (!%p631_p8)
}
  0x42   : > { %s635_s26 = scalar_lea.vmem %s883_s10, 128  ;;  %s741_s7 = smov [#allocation2]  }
  0x43   : > { %p636_p12 = scmp.ne.s32.totalorder %s883_s10, %s635_s26  ;;  %s640_s8 = sshll.u32 %s741_s7, 4  ;;  %s641_s8 = int_to_ptr.vmem [resolvable:$false] %s640_s8 }
  0x44   : > { %s642_s21 = scalar_lea.vmem %s641_s8, 256  ;;  %p643_p5 = scmp.lt.s32.totalorder %s883_s10, %s641_s8 }
  0x45   : > { %p638_p11 = pnand %p636_p12, %p622_p3  ;;  %p644_p9 = scmp.lt.s32.totalorder %s642_s21, %s635_s26 }
  0x47   : > { %p639_p0 = pneg %p638_p11  ;;  %p645_p1 = por %p644_p9, %p643_p5 }
  0x49   : > { %p646_p2 = pnand %p645_p1, %p639_p0 }
  0x4b   : > { %649 = shalt.err (!%p646_p2)
}
  0x4c   : > { %523 = dma.hbm_to_vmem [thread:$0]  (!%p887_p13), %s881_s9, 128, %s883_s10, %s189_s18  }
  0x4d   : > { %p1012_p7 = scmp.ne.s32.totalorder %s1006_s24, 0 }
  0x4e   : > { %s919_s19 = sand.u32 (!%p1012_p7), 1, %s720_s13   ;;  %p1013_p3 = scmp.ne.s32.totalorder (!%p1012_p7), %s1004_s22, 0 }
  0x4f   : > { %209 = sbr.rel (%p1012_p7) target bundleno = 449 (0x1c1), region = 32  ;;  %s479_s25 = sshll.u32 (!%p1012_p7), %s919_s19, 3 }
  0x50   : > { %s212_s27 = scalar_lea.sflag (!%p1012_p7), [#allocation3], %s919_s19  ;;  %s215_s4 = scalar_lea.vmem (!%p1012_p7), [#allocation2], %s479_s25 }
  0x56   : > { %703 = dma.done.wait (%p1013_p3), %s212_s27, 128  }
  0x57   : > { %705 = vsyncadd (%p1013_p3), %s212_s27, 4294967168  ;;  %p1014_p4 = scmp.ne.s32.totalorder %s1002_s20, 0 }
  0x59   : > { %707 = dma.done.wait (%p1014_p4), [#allocation6], 256  }
  0x5a   : > { %709 = vsyncadd (%p1014_p4), [#allocation6], 4294967040  ;;  %v742_v0 = vmov 0.0   ;;  %vm743_vm0 = vmmov 0   ;;  %v590_v1 = vld [vmem:[#allocation5] sm:$0xff]   ;;  %v591_v2 = vld [vmem:[#allocation5 + $0x8] sm:$0xff]  }
  0x5b   : > { %500 = vmatprep.subr.bf16.mxu0 %v742_v0  ;;  %504 = vmatprep.mubr.msk.bf16.mxu0 %vm743_vm0, %v742_v0  ;;  %v250_v3 = vld [vmem:[%s215_s4] sm:$0xff]  ;;  %vm275_vm1 = vcmask 261120   ;;  %s481_s20 = sshll.u32 %s919_s19, 4  ;;  %vm320_vm2 = vcmask 60416   ;;  %s744_s9 = smov 104  }
  0x5c   : > { %501 = vmatpush3.bf16.msra.mxu0 %v590_v1  ;;  %v251_v4 = vpack.c.bf16 %v250_v3, %v250_v3  ;;  %v482_v5 = vld [vmem:[%s996_s2] ss:$0 sm:$0xff]  ;;  %s745_s10 = smov 120   ;;  %s244_s11 = scalar_lea.vmem [#allocation7], %s481_s20 }
  0x5d   : > { %502 = vmatprep.subr.bf16.mxu0 %v742_v0  ;;  %s746_s18 = smov 112   ;;  %s357_s29 = sshll.u32 %s244_s11, 4  ;;  %s937_s29 = int_to_ptr.vmem [resolvable:$true] %s357_s29 }
  0x5e   : > { %s496_s6 = sshll.u32 %s728_s15, 8  ;;  %s341_s15 = scalar_lea.sflag [#allocation4], %s919_s19 }
  0x5f   : > { %s944_s8 = scalar_lea.hbm %s997_s3, %s496_s6  ;;  %s650_s21 = scalar_lea.vmem %s937_s29, 256 }
  0x60   : > { %503 = vmatpush3.bf16.msra.mxu0 %v591_v2  ;;  %p651_p13 = scmp.ne.s32.totalorder %s937_s29, %s650_s21  ;;  %s747_s25 = smov [#allocation7]  }
  0x61   : > { %s654_s27 = sshll.u32 %s747_s25, 4  ;;  %s655_s27 = int_to_ptr.vmem [resolvable:$false] %s654_s27 }
  0x62   : > { %p652_p6 = pnand %p651_p13, %p866_p10  ;;  %s656_s4 = scalar_lea.vmem %s655_s27, 512 }
  0x63   : > { %505 = vmatmul.mubr.msk.bf16.vlgmr.msra.gmra.mrb[0].mxu0 %vm275_vm1, %v251_v4  ;;  %p657_p12 = scmp.lt.s32.totalorder %s937_s29, %s655_s27  ;;  %p658_p11 = scmp.lt.s32.totalorder %s656_s4, %s650_s21 }
  0x64   : > { %p653_p8 = pneg %p652_p6 }
  0x65   : > { %p659_p0 = por %p658_p11, %p657_p12 }
  0x67   : > { %p660_p5 = pnand %p659_p0, %p653_p8 }
 0x136   : > { %v313_v6 = vpop.f32.mrb[0].mxu0 }
 0x137   : > { %v314_v7 = vadd.f32 %v482_v5, %v313_v6  ;;  %v506_v8 = vpop.f32.mrb[1].mxu0 }
 0x138   : > { %v316_v9 = vpop.f32.mrb[2].mxu0 }
 0x139   : > { %v319_v10 = vpack.c.bf16 %v314_v7, %v314_v7  ;;  %v507_v11 = vpop.f32.mrb[3].mxu0 }
 0x13b   : > { %335 = vrot.lane.b32.xlu1 %v319_v10, %s744_s9  ;;  %325 = vrot.lane.b32.xlu0 %v319_v10, %s745_s10  ;;  %321 = vst.msk [vmem:[%s244_s11] sm:$0xf] %vm320_vm2, %v319_v10 }
 0x13f   : > { %330 = vrot.lane.b32.xlu0 %v319_v10, %s746_s18 }
 0x1ad   : > { %v336_v12 = vpop.permute.xlu1 %335  ;;  %v326_v13 = vpop.permute.xlu0 %325 }
 0x1ae   : > { %489 = vst.msk [vmem:[%s244_s11 + $0xc] sm:$0xf] %vm320_vm2, %v336_v12  ;;  %487 = vst.msk [vmem:[%s244_s11 + $0x4] sm:$0xf] %vm320_vm2, %v326_v13 }
 0x1b1   : > { %v331_v14 = vpop.permute.xlu0 %330 }
 0x1b2   : > { %488 = vst.msk [vmem:[%s244_s11 + $0x8] sm:$0xf] %vm320_vm2, %v331_v14 }
 0x1b3   : > { %663 = shalt.err (!%p660_p5)
}
 0x1b4   : > { %s664_s22 = scalar_lea.hbm %s944_s8, 256  ;;  %s668_s9 = scalar_lea.hbm %s997_s3, 512 }
 0x1b5   : > { %p665_p9 = scmp.ne.s32.totalorder %s944_s8, %s664_s22  ;;  %p669_p7 = scmp.lt.u32.totalorder %s944_s8, %s997_s3 }
 0x1b6   : > { %p670_p3 = scmp.lt.u32.totalorder %s668_s9, %s664_s22  ;;  %p672_p13 = scmp.lt.u32.totalorder %s664_s22, %s944_s8 }
 0x1b7   : > { %p666_p1 = pnand %p665_p9, %p866_p10 }
 0x1b8   : > { %p671_p4 = por %p670_p3, %p669_p7 }
 0x1b9   : > { %p667_p2 = pneg %p666_p1 }
 0x1ba   : > { %p673_p6 = por %p672_p13, %p671_p4 }
 0x1bc   : > { %p674_p8 = pnand %p673_p6, %p667_p2 }
 0x1be   : > { %677 = shalt.err (!%p674_p8)
}
 0x1bf   : > { %s748_s18 = smov 64   ;;  %s749_s6 = smov 4  }
 0x1c0   : > { %514 = dma.vmem_to_hbm [thread:$0]  (%p866_p10), %s937_s29, 256, %s944_s8, %s341_s15, %s748_s18, %s748_s18, %s749_s6  }
 0x1c1 PF: > { %s372_s26 = sand.u32 1, %s716_s12   ;;  %p1015_p12 = scmp.ne.s32.totalorder %s1005_s23, 0 }
 0x1c2   : > { %p1016_p11 = scmp.ge.s32.totalorder %s736_s17, 2  ;;  %s373_s7 = scalar_lea.sflag [#allocation4], %s372_s26 }
 0x1c4   : > { %p525_p0 = pnand %p1016_p11, %p1015_p12 }
 0x1c6   : > { %711 = dma.done.wait (!%p525_p0), %s373_s7, 256  }
 0x1c7   : > { %713 = vsyncadd (!%p525_p0), %s373_s7, 4294967040  ;;  %s20_s17 = sadd.s32 1, %s736_s17   ;;  %s1017_s12 = smov %s720_s13 }
 0x1c8   : > { %p17_p5 = scmp.ge.s32.totalorder %s20_s17, 4   ;;  %s1018_s13 = smov %s724_s14 }
 0x1c9   : > { %s1019_s14 = smov %s875_s5  ;;  %s1020_s15 = smov %s732_s16 }
 0x1ca   : > { %s1021_s16 = smov %s1023_s28  ;;  %19 = sbr.rel (!%p17_p5) target bundleno = 7 (0x7), region = 88 }
 0x1d1   :  { %378 = vsyncpa [#allocation3], 1 }
 0x1d2   :  { %380 = vsyncpa [#allocation3 + $0x1], 1 }
 0x1d3   :  { %381 = vsyncpa [#allocation6], 1 }
 0x1d4   :  { %382 = vsyncpa [#allocation4], 1 }
 0x1d5   :  { %384 = vsyncpa [#allocation4 + $0x1], 1 }

</bundles_post_ra>
